<compile_context>
chip_gen: v7x
topology: tpu7x:2x2x1
jax: 0.10.0
libtpu: 0.0.40
codegen_flags: <defaults>
</compile_context>

<pallas_src>
import functools

import jax
import jax.numpy as jnp
import numpy as np
from jax.experimental import pallas as pl
from jax.experimental.pallas import tpu as pltpu


# ------------------------------- fused kernel -------------------------------


def _cgmm_fused_kernel(onehot_ref, adj_ref, pi_ref, bones_ref, st_ref,
                       b_ref, qbd_ref, ll_ref, *, C, L):
    """All L CGMM layers in one invocation; h carried as a value across layers.

    onehot_ref : (N, M)        bf16   one-hot node labels
    adj_ref    : (N, N)        bf16   row-normalized adjacency (scatter-mean)
    pi_ref     : (1, GC)       f32    prior, columns ordered (g, c)
    bones_ref  : (GC, GC)      bf16   block-diagonal of ones (per-model sum+bcast)
    st_ref     : (G, GC)       bf16   per-model row indicator
    b_ref      : (L, M, GC)    bf16   per-layer emission matrices
    qbd_ref    : (L-1, GC, GC) bf16   per-layer block-diagonal transition matrices
    ll_ref     : (L, G, N)     f32    output log-likelihood
    """
    f32 = jnp.float32
    bf16 = jnp.bfloat16
    eps = 1e-12

    onehot = onehot_ref[...]          # (N, M)
    adj = adj_ref[...]                # (N, N)
    bones = bones_ref[...]            # (GC, GC)
    st = st_ref[...]                  # (G, GC)

    def finish(u, layer):
        # u: (N, GC) f32 unnormalized posterior (already summed over l for layers>0)
        ub = u.astype(bf16)
        # per-model denominator, broadcast back over the model's C lanes: one MXU op
        denom_b = jnp.dot(ub, bones, preferred_element_type=f32)          # (N, GC)
        # independent lane-dense (G, N) log-likelihood block: ST @ u^T
        denom_gn = jax.lax.dot_general(st, ub, (((1,), (1,)), ((), ())),
                                       preferred_element_type=f32)        # (G, N)
        ll_ref[layer] = jnp.log(denom_gn)
        # posterior_i: divide via EUP reciprocal (off the MXU/VPU critical path)
        return u * pl.reciprocal(denom_b, approx=True)

    # ---- layer 0: u = B0[:, x] * Pi + eps ----
    bx = jnp.dot(onehot, b_ref[0], preferred_element_type=f32)            # (N, GC)
    h = finish(bx * pi_ref[...] + eps, 0)

    # ---- layers 1 .. L-1 (short, fully unrolled) ----
    for layer in range(1, L):
        # scatter-mean neighbour aggregation as a dense row-normalized matmul
        aggr = jnp.dot(adj, h.astype(bf16), preferred_element_type=f32)   # (N, GC)
        # sum_l Q[i, l] * aggr[n, l] per model == block-diagonal matmul
        tmp = jnp.dot(aggr.astype(bf16), qbd_ref[layer - 1],
                      preferred_element_type=f32)                         # (N, GC)
        bx = jnp.dot(onehot, b_ref[layer], preferred_element_type=f32)    # (N, GC)
        # eps was added per (i, l) entry before the sum over l -> C * eps here
        h = finish(bx * tmp + C * eps, layer)


# ------------------------------ CGMM forward ---------------------------------


def cgmm_forward(x, edge_index, torch_params):
    """x: (N,) int labels in [0, M); edge_index: (2, E) int; params in torch layout."""
    N = x.shape[0]
    L = len(torch_params["B"])
    C, M, G = torch_params["B"][0].shape
    GC = G * C
    bf16 = jnp.bfloat16

    # --- glue (plain JAX, O(N + E + params)): one-hot labels, dense row-
    #     normalized adjacency (== scatter-mean), parameter preprocessing ---
    onehot = jax.nn.one_hot(x, M, dtype=bf16)                               # (N, M)
    tgt, src = edge_index[0], edge_index[1]
    counts = jnp.zeros((N,), jnp.float32).at[tgt].add(1.0)
    inv = jnp.where(counts > 0, 1.0 / counts, 0.0)
    adj = (jnp.zeros((N, N), jnp.float32).at[tgt, src].add(1.0)
           * inv[:, None]).astype(bf16)                                     # (N, N)

    # B_l: softmax over M, laid out (M, G*C) with columns ordered (g, c)
    b_all = jnp.stack(
        [jnp.transpose(jax.nn.softmax(torch_params["B"][l], axis=1),
                       (1, 2, 0)).reshape(M, GC) for l in range(L)],
        axis=0).astype(bf16)                                                # (L, M, GC)
    # Pi: softmax over C, laid out (1, G*C) — stays f32 (VPU multiply only)
    pi = jnp.transpose(jax.nn.softmax(torch_params["Pi"], axis=0),
                       (1, 0)).reshape(1, GC)
    # Q_l: softmax over i, stored block-diagonal (G*C, G*C): rows (g,l) -> cols (g,i)
    eye_g = jnp.eye(G, dtype=jnp.float32)
    qbd_list = []
    for l in range(1, L):
        q = jax.nn.softmax(torch_params["Q"][l], axis=0)                    # (C_i, C_l, G)
        q_t = jnp.transpose(q, (2, 1, 0))                                   # (G, l, i)
        qbd_list.append(jnp.einsum("gli,gh->glhi", q_t, eye_g).reshape(GC, GC))
    qbd_all = (jnp.stack(qbd_list, axis=0) if qbd_list
               else jnp.zeros((1, GC, GC), jnp.float32)).astype(bf16)       # (L-1, GC, GC)

    # precomputed indicator algebra (exact in bf16): block-diag ones + ST
    gidx = jnp.arange(GC) // C
    block_ones = (gidx[:, None] == gidx[None, :]).astype(bf16)              # (GC, GC)
    st = (jnp.arange(G)[:, None] == gidx[None, :]).astype(bf16)             # (G, GC)

    kernel = functools.partial(_cgmm_fused_kernel, C=C, L=L)
    vmem = pl.BlockSpec(memory_space=pltpu.MemorySpace.VMEM)
    ll = pl.pallas_call(
        kernel,
        out_shape=jax.ShapeDtypeStruct((L, G, N), jnp.float32),
        in_specs=[vmem] * 7,
        out_specs=vmem,
    )(onehot, adj, pi, block_ones, st, b_all, qbd_all)

    # TODO(synk): for large graphs, add a node-tiled grid (L, N//tn) with
    # dimension_semantics=("arbitrary","parallel"), adj blocks (tn, N) (bf16,
    # Buffered(3) if DMA is exposed), h ping-ponged through two (N, GC)
    # buffers, a raised vmem_limit_bytes, and a sparse/scalar-prefetch gather
    # instead of the dense O(N^2) adjacency and O(N*M) one-hot; unnecessary at
    # these demo sizes.
    return jnp.transpose(ll, (2, 0, 1))                                     # (N, L, G)


# ---------------------------- pure-JAX reference -----------------------------


def reference_forward(x, edge_index, torch_params):
    N = x.shape[0]
    L = len(torch_params["B"])
    tgt, src = edge_index[0], edge_index[1]
    counts = jnp.zeros((N,), jnp.float32).at[tgt].add(1.0)

    lls = []
    B = jax.nn.softmax(torch_params["B"][0], axis=1)            # (C, M, G)
    Pi = jax.nn.softmax(torch_params["Pi"], axis=0)             # (C, G)
    u = jnp.transpose(B[:, x], (1, 0, 2)) * Pi[None] + 1e-12    # (N, C, G)
    h = u / u.sum(axis=1, keepdims=True)
    lls.append(jnp.log(u.sum(axis=1)))
    for l in range(1, L):
        Q = jax.nn.softmax(torch_params["Q"][l], axis=0)        # (C, C, G)
        B = jax.nn.softmax(torch_params["B"][l], axis=1)        # (C, M, G)
        msgs = h[src]                                           # (E, C, G)
        aggr = jnp.zeros((N,) + msgs.shape[1:], jnp.float32).at[tgt].add(msgs)
        aggr = aggr / jnp.maximum(counts, 1.0)[:, None, None]   # scatter-mean
        B_nodes = jnp.transpose(B[:, x], (1, 0, 2))[:, :, None, :]   # (N, C, 1, G)
        u = B_nodes * (Q[None] * aggr[:, None, :, :]) + 1e-12        # (N, C, C, G)
        denom = u.sum(axis=(1, 2))
        h = u.sum(axis=2) / denom[:, None, :]
        lls.append(jnp.log(denom))
    return jnp.stack(lls, axis=1)    # (N, L, G)


# --------------------------------- main --------------------------------------


if __name__ == "__main__":
    N, E, C, M, G, L = 16, 48, 8, 16, 8, 3

    key = jax.random.PRNGKey(0)
    keys = jax.random.split(key, 2 + 2 * L)
    x = jax.random.randint(keys[0], (N,), 0, M, dtype=jnp.int32)
    edge_index = jax.random.randint(keys[1], (2, E), 0, N, dtype=jnp.int32)

    # deterministic uniform [0,1) init, matching CGMM.__init__ shapes (torch layout)
    torch_params = {"B": [], "Q": [None], "Pi": None}
    torch_params["B"].append(jax.random.uniform(keys[2], (C, M, G), jnp.float32))
    torch_params["Pi"] = jax.random.uniform(keys[3], (C, G), jnp.float32)
    for l in range(1, L):
        torch_params["Q"].append(
            jax.random.uniform(keys[2 + 2 * l], (C, C, G), jnp.float32))
        torch_params["B"].append(
            jax.random.uniform(keys[3 + 2 * l], (C, M, G), jnp.float32))

    out = cgmm_forward(x, edge_index, torch_params)
    out = jax.block_until_ready(out)          # (N, n_layers, n_gen)

    ref = reference_forward(x, edge_index, torch_params)
    # Kernel matmuls use bf16 inputs / f32 accumulation (== default MXU
    # precision) and the posterior normalization uses the EUP approximate
    # reciprocal, so the tolerance vs. the f32 reference covers the
    # accumulated ~2^-9-level relative error across 3 layers.
    np.testing.assert_allclose(np.asarray(out), np.asarray(ref),
                               rtol=5e-2, atol=1e-2)
    print("KERNEL_OK")
</pallas_src>

<mosaic_0001>
module attributes {stable_mosaic.version = 11 : i64} {
  func.func @_cgmm_fused_kernel(%arg0: memref<16x16xbf16, #tpu.memory_space<vmem>>, %arg1: memref<16x16xbf16, #tpu.memory_space<vmem>>, %arg2: memref<1x64xf32, #tpu.memory_space<vmem>>, %arg3: memref<64x64xbf16, #tpu.memory_space<vmem>>, %arg4: memref<8x64xbf16, #tpu.memory_space<vmem>>, %arg5: memref<3x16x64xbf16, #tpu.memory_space<vmem>>, %arg6: memref<2x64x64xbf16, #tpu.memory_space<vmem>>, %arg7: memref<3x8x16xf32, #tpu.memory_space<vmem>>) attributes {dimension_semantics = [], scalar_prefetch = 0 : i64, scratch_operands = 0 : i64, tpu.core_type = #tpu.core_type<tc>} {
    %c0 = arith.constant 0 : index
    %c0_0 = arith.constant 0 : index
    %0 = vector.load %arg0[%c0, %c0_0] : memref<16x16xbf16, #tpu.memory_space<vmem>>, vector<16x16xbf16>
    %c0_1 = arith.constant 0 : index
    %c0_2 = arith.constant 0 : index
    %1 = vector.load %arg1[%c0_1, %c0_2] : memref<16x16xbf16, #tpu.memory_space<vmem>>, vector<16x16xbf16>
    %c0_3 = arith.constant 0 : index
    %c0_4 = arith.constant 0 : index
    %2 = vector.load %arg3[%c0_3, %c0_4] : memref<64x64xbf16, #tpu.memory_space<vmem>>, vector<64x64xbf16>
    %c0_5 = arith.constant 0 : index
    %c0_6 = arith.constant 0 : index
    %3 = vector.load %arg4[%c0_5, %c0_6] : memref<8x64xbf16, #tpu.memory_space<vmem>>, vector<8x64xbf16>
    %c0_7 = arith.constant 0 : index
    %c0_8 = arith.constant 0 : index
    %c0_9 = arith.constant 0 : index
    %4 = vector.load %arg5[%c0_7, %c0_8, %c0_9] : memref<3x16x64xbf16, #tpu.memory_space<vmem>>, vector<1x16x64xbf16>
    %5 = vector.shape_cast %4 : vector<1x16x64xbf16> to vector<16x64xbf16>
    %cst = arith.constant dense<0.000000e+00> : vector<16x64xf32>
    %6 = tpu.matmul %0, %5, %cst {dimension_numbers = #tpu.dot_dimension_numbers<[1], [0], [0], [1], [0, 0, 1, 1], [], []>} : vector<16x16xbf16>, vector<16x64xbf16>, vector<16x64xf32> -> vector<16x64xf32>
    %c0_10 = arith.constant 0 : index
    %c0_11 = arith.constant 0 : index
    %7 = vector.load %arg2[%c0_10, %c0_11] : memref<1x64xf32, #tpu.memory_space<vmem>>, vector<1x64xf32>
    %8 = vector.broadcast %7 : vector<1x64xf32> to vector<16x64xf32>
    %9 = arith.mulf %6, %8 : vector<16x64xf32>
    %cst_12 = arith.constant 9.99999996E-13 : f32
    %10 = vector.broadcast %cst_12 : f32 to vector<16x64xf32>
    %11 = arith.addf %9, %10 : vector<16x64xf32>
    %12 = arith.truncf %11 : vector<16x64xf32> to vector<16x64xbf16>
    %cst_13 = arith.constant dense<0.000000e+00> : vector<16x64xf32>
    %13 = tpu.matmul %12, %2, %cst_13 {dimension_numbers = #tpu.dot_dimension_numbers<[1], [0], [0], [1], [0, 0, 1, 1], [], []>} : vector<16x64xbf16>, vector<64x64xbf16>, vector<16x64xf32> -> vector<16x64xf32>
    %cst_14 = arith.constant dense<0.000000e+00> : vector<8x16xf32>
    %14 = tpu.matmul %3, %12, %cst_14 {dimension_numbers = #tpu.dot_dimension_numbers<[1], [1], [0], [0], [0, 0, 1, 0], [], []>} : vector<8x64xbf16>, vector<16x64xbf16>, vector<8x16xf32> -> vector<8x16xf32>
    %15 = math.log %14 : vector<8x16xf32>
    %c0_15 = arith.constant 0 : index
    %c0_16 = arith.constant 0 : index
    %c0_17 = arith.constant 0 : index
    %16 = vector.load %arg7[%c0_15, %c0_16, %c0_17] : memref<3x8x16xf32, #tpu.memory_space<vmem>>, vector<1x8x16xf32>
    %17 = vector.shape_cast %16 : vector<1x8x16xf32> to vector<8x16xf32>
    %18 = vector.shape_cast %15 : vector<8x16xf32> to vector<1x8x16xf32>
    tpu.vector_store %arg7[%c0_15, %c0_16, %c0_17], %18 {strides = array<i32>} : memref<3x8x16xf32, #tpu.memory_space<vmem>>, vector<1x8x16xf32>,
    %19 = tpu.reciprocal %13 {approx = true} : vector<16x64xf32> -> vector<16x64xf32>
    %20 = arith.mulf %11, %19 : vector<16x64xf32>
    %21 = arith.truncf %20 : vector<16x64xf32> to vector<16x64xbf16>
    %cst_18 = arith.constant dense<0.000000e+00> : vector<16x64xf32>
    %22 = tpu.matmul %1, %21, %cst_18 {dimension_numbers = #tpu.dot_dimension_numbers<[1], [0], [0], [1], [0, 0, 1, 1], [], []>} : vector<16x16xbf16>, vector<16x64xbf16>, vector<16x64xf32> -> vector<16x64xf32>
    %23 = arith.truncf %22 : vector<16x64xf32> to vector<16x64xbf16>
    %c0_19 = arith.constant 0 : index
    %c0_20 = arith.constant 0 : index
    %c0_21 = arith.constant 0 : index
    %24 = vector.load %arg6[%c0_19, %c0_20, %c0_21] : memref<2x64x64xbf16, #tpu.memory_space<vmem>>, vector<1x64x64xbf16>
    %25 = vector.shape_cast %24 : vector<1x64x64xbf16> to vector<64x64xbf16>
    %cst_22 = arith.constant dense<0.000000e+00> : vector<16x64xf32>
    %26 = tpu.matmul %23, %25, %cst_22 {dimension_numbers = #tpu.dot_dimension_numbers<[1], [0], [0], [1], [0, 0, 1, 1], [], []>} : vector<16x64xbf16>, vector<64x64xbf16>, vector<16x64xf32> -> vector<16x64xf32>
    %c1 = arith.constant 1 : index
    %c0_23 = arith.constant 0 : index
    %c0_24 = arith.constant 0 : index
    %27 = vector.load %arg5[%c1, %c0_23, %c0_24] : memref<3x16x64xbf16, #tpu.memory_space<vmem>>, vector<1x16x64xbf16>
    %28 = vector.shape_cast %27 : vector<1x16x64xbf16> to vector<16x64xbf16>
    %cst_25 = arith.constant dense<0.000000e+00> : vector<16x64xf32>
    %29 = tpu.matmul %0, %28, %cst_25 {dimension_numbers = #tpu.dot_dimension_numbers<[1], [0], [0], [1], [0, 0, 1, 1], [], []>} : vector<16x16xbf16>, vector<16x64xbf16>, vector<16x64xf32> -> vector<16x64xf32>
    %30 = arith.mulf %29, %26 : vector<16x64xf32>
    %cst_26 = arith.constant 8.000000e-12 : f32
    %31 = vector.broadcast %cst_26 : f32 to vector<16x64xf32>
    %32 = arith.addf %30, %31 : vector<16x64xf32>
    %33 = arith.truncf %32 : vector<16x64xf32> to vector<16x64xbf16>
    %cst_27 = arith.constant dense<0.000000e+00> : vector<16x64xf32>
    %34 = tpu.matmul %33, %2, %cst_27 {dimension_numbers = #tpu.dot_dimension_numbers<[1], [0], [0], [1], [0, 0, 1, 1], [], []>} : vector<16x64xbf16>, vector<64x64xbf16>, vector<16x64xf32> -> vector<16x64xf32>
    %cst_28 = arith.constant dense<0.000000e+00> : vector<8x16xf32>
    %35 = tpu.matmul %3, %33, %cst_28 {dimension_numbers = #tpu.dot_dimension_numbers<[1], [1], [0], [0], [0, 0, 1, 0], [], []>} : vector<8x64xbf16>, vector<16x64xbf16>, vector<8x16xf32> -> vector<8x16xf32>
    %36 = math.log %35 : vector<8x16xf32>
    %c1_29 = arith.constant 1 : index
    %c0_30 = arith.constant 0 : index
    %c0_31 = arith.constant 0 : index
    %37 = vector.load %arg7[%c1_29, %c0_30, %c0_31] : memref<3x8x16xf32, #tpu.memory_space<vmem>>, vector<1x8x16xf32>
    %38 = vector.shape_cast %37 : vector<1x8x16xf32> to vector<8x16xf32>
    %39 = vector.shape_cast %36 : vector<8x16xf32> to vector<1x8x16xf32>
    tpu.vector_store %arg7[%c1_29, %c0_30, %c0_31], %39 {strides = array<i32>} : memref<3x8x16xf32, #tpu.memory_space<vmem>>, vector<1x8x16xf32>,
    %40 = tpu.reciprocal %34 {approx = true} : vector<16x64xf32> -> vector<16x64xf32>
    %41 = arith.mulf %32, %40 : vector<16x64xf32>
    %42 = arith.truncf %41 : vector<16x64xf32> to vector<16x64xbf16>
    %cst_32 = arith.constant dense<0.000000e+00> : vector<16x64xf32>
    %43 = tpu.matmul %1, %42, %cst_32 {dimension_numbers = #tpu.dot_dimension_numbers<[1], [0], [0], [1], [0, 0, 1, 1], [], []>} : vector<16x16xbf16>, vector<16x64xbf16>, vector<16x64xf32> -> vector<16x64xf32>
    %44 = arith.truncf %43 : vector<16x64xf32> to vector<16x64xbf16>
    %c1_33 = arith.constant 1 : index
    %c0_34 = arith.constant 0 : index
    %c0_35 = arith.constant 0 : index
    %45 = vector.load %arg6[%c1_33, %c0_34, %c0_35] : memref<2x64x64xbf16, #tpu.memory_space<vmem>>, vector<1x64x64xbf16>
    %46 = vector.shape_cast %45 : vector<1x64x64xbf16> to vector<64x64xbf16>
    %cst_36 = arith.constant dense<0.000000e+00> : vector<16x64xf32>
    %47 = tpu.matmul %44, %46, %cst_36 {dimension_numbers = #tpu.dot_dimension_numbers<[1], [0], [0], [1], [0, 0, 1, 1], [], []>} : vector<16x64xbf16>, vector<64x64xbf16>, vector<16x64xf32> -> vector<16x64xf32>
    %c2 = arith.constant 2 : index
    %c0_37 = arith.constant 0 : index
    %c0_38 = arith.constant 0 : index
    %48 = vector.load %arg5[%c2, %c0_37, %c0_38] : memref<3x16x64xbf16, #tpu.memory_space<vmem>>, vector<1x16x64xbf16>
    %49 = vector.shape_cast %48 : vector<1x16x64xbf16> to vector<16x64xbf16>
    %cst_39 = arith.constant dense<0.000000e+00> : vector<16x64xf32>
    %50 = tpu.matmul %0, %49, %cst_39 {dimension_numbers = #tpu.dot_dimension_numbers<[1], [0], [0], [1], [0, 0, 1, 1], [], []>} : vector<16x16xbf16>, vector<16x64xbf16>, vector<16x64xf32> -> vector<16x64xf32>
    %51 = arith.mulf %50, %47 : vector<16x64xf32>
    %cst_40 = arith.constant 8.000000e-12 : f32
    %52 = vector.broadcast %cst_40 : f32 to vector<16x64xf32>
    %53 = arith.addf %51, %52 : vector<16x64xf32>
    %54 = arith.truncf %53 : vector<16x64xf32> to vector<16x64xbf16>
    %cst_41 = arith.constant dense<0.000000e+00> : vector<8x16xf32>
    %55 = tpu.matmul %3, %54, %cst_41 {dimension_numbers = #tpu.dot_dimension_numbers<[1], [1], [0], [0], [0, 0, 1, 0], [], []>} : vector<8x64xbf16>, vector<16x64xbf16>, vector<8x16xf32> -> vector<8x16xf32>
    %56 = math.log %55 : vector<8x16xf32>
    %c2_42 = arith.constant 2 : index
    %c0_43 = arith.constant 0 : index
    %c0_44 = arith.constant 0 : index
    %57 = vector.load %arg7[%c2_42, %c0_43, %c0_44] : memref<3x8x16xf32, #tpu.memory_space<vmem>>, vector<1x8x16xf32>
    %58 = vector.shape_cast %57 : vector<1x8x16xf32> to vector<8x16xf32>
    %59 = vector.shape_cast %56 : vector<8x16xf32> to vector<1x8x16xf32>
    tpu.vector_store %arg7[%c2_42, %c0_43, %c0_44], %59 {strides = array<i32>} : memref<3x8x16xf32, #tpu.memory_space<vmem>>, vector<1x8x16xf32>,
    return
  }
}

</mosaic_0001>

<bundles_post_ra>
// kernel: tpu_custom_call.1
= control target key start
LH: loop header
LB: loop body
LE: loop exit
PB: predicated region body
PF: predicated region fallthrough
CT: control target
= control target key end

     0   :  { %12 = vsyncpa [#allocation3], 0  ;;  %s1405_s0 = inlined_call_operand.hbm [shape: bf16[16,16], index: 0, kind: input, shape index: {}]   ;;  %s1406_s1 = inlined_call_operand.hbm [shape: bf16[16,16], index: 1, kind: input, shape index: {}]   ;;  %s1407_s2 = inlined_call_operand.vmem [shape: f32[1,64], index: 2, kind: input, shape index: {}]   ;;  %s1408_s3 = inlined_call_operand.hbm [shape: bf16[64,64], index: 3, kind: input, shape index: {}]   ;;  %s1409_s4 = inlined_call_operand.vmem [shape: bf16[8,64], index: 4, kind: input, shape index: {}]   ;;  %s1410_s5 = inlined_call_operand.hbm [shape: bf16[3,16,64], index: 5, kind: input, shape index: {}]   ;;  %s1411_s6 = inlined_call_operand.hbm [shape: bf16[2,64,64], index: 6, kind: input, shape index: {}]   ;;  %s1412_s7 = inlined_call_operand.hbm [shape: f32[3,8,16], index: 7, kind: output, shape index: {}]  }
   0x1   :  { %13 = vsyncpa [#allocation6], 0 }
   0x2   :  { %14 = vsyncpa [#allocation9], 0 }
   0x3   :  { %15 = vsyncpa [#allocation4], 0  ;;  %s1158_s24 = smov [#allocation5]   ;;  %s1159_s26 = smov [#allocation8]  }
   0x4   :  { %s33_s25 = sshll.u32 %s1158_s24, 4  ;;  %s61_s27 = sshll.u32 %s1159_s26, 4  ;;  %s34_s25 = int_to_ptr.vmem [resolvable:$true] %s33_s25  ;;  %s1210_s27 = int_to_ptr.vmem [resolvable:$true] %s61_s27 }
   0x5   :  { %s1018_s30 = scalar_lea.hbm %s1406_s1, 128 }
   0x6   :  { %p1019_p0 = scmp.ne.s32.totalorder %s1406_s1, %s1018_s30  ;;  %p1022_p1 = scmp.lt.u32.totalorder %s1018_s30, %s1406_s1 }
   0x8   :  { %p1024_p2 = pnand %p1022_p1, %p1019_p0 }
   0xa   :  { %1027 = shalt.err (!%p1024_p2)
}
   0xb   :  { %s1028_s12 = scalar_lea.vmem %s34_s25, 128  ;;  %p1033_p4 = scmp.lt.s32.totalorder %s34_s25, %s34_s25 }
   0xc   :  { %p1029_p3 = scmp.ne.s32.totalorder %s34_s25, %s1028_s12  ;;  %p1034_p5 = scmp.lt.s32.totalorder %s1028_s12, %s1028_s12 }
   0xe   :  { %p1035_p6 = por %p1034_p5, %p1033_p4 }
  0x10   :  { %p1036_p7 = pnand %p1035_p6, %p1029_p3 }
  0x12   :  { %1039 = shalt.err (!%p1036_p7)
}
  0x13   :  { %s1160_s13 = smov 64   ;;  %s1161_s14 = smov 4  }
  0x14   :  { %39 = dma.hbm_to_vmem [thread:$0]  %s1406_s1, 128, %s34_s25, [#allocation6], %s1160_s13, %s1160_s13, %s1161_s14  }
  0x15   :  { %s1040_s19 = scalar_lea.hbm %s1410_s5, 384 }
  0x16   :  { %p1041_p8 = scmp.ne.s32.totalorder %s1410_s5, %s1040_s19  ;;  %p1044_p9 = scmp.lt.u32.totalorder %s1040_s19, %s1410_s5 }
  0x18   :  { %p1046_p10 = pnand %p1044_p9, %p1041_p8 }
  0x1a   :  { %1049 = shalt.err (!%p1046_p10)
}
  0x1b   :  { %s1050_s24 = scalar_lea.vmem %s1210_s27, 384  ;;  %p1055_p12 = scmp.lt.s32.totalorder %s1210_s27, %s1210_s27 }
  0x1c   :  { %p1051_p11 = scmp.ne.s32.totalorder %s1210_s27, %s1050_s24  ;;  %p1056_p13 = scmp.lt.s32.totalorder %s1050_s24, %s1050_s24 }
  0x1e   :  { %p1057_p0 = por %p1056_p13, %p1055_p12 }
  0x20   :  { %p1058_p1 = pnand %p1057_p0, %p1051_p11 }
  0x22   :  { %1061 = shalt.err (!%p1058_p1)
}
  0x23   :  { %67 = dma.hbm_to_vmem [thread:$0]  %s1410_s5, 384, %s1210_s27, [#allocation9], %s1160_s13, %s1160_s13, %s1161_s14  }
  0x24   :  { %s1162_s26 = smov [#allocation2]   ;;  %s1163_s29 = smov [#allocation7]  }
  0x25   :  { %s21_s28 = sshll.u32 %s1162_s26, 4  ;;  %s47_s30 = sshll.u32 %s1163_s29, 4  ;;  %s22_s28 = int_to_ptr.vmem [resolvable:$true] %s21_s28  ;;  %s1247_s30 = int_to_ptr.vmem [resolvable:$true] %s47_s30 }
  0x26   :  { %s1062_s10 = scalar_lea.hbm %s1405_s0, 128 }
  0x27   :  { %p1063_p2 = scmp.ne.s32.totalorder %s1405_s0, %s1062_s10  ;;  %p1066_p3 = scmp.lt.u32.totalorder %s1062_s10, %s1405_s0 }
  0x29   :  { %p1068_p4 = pnand %p1066_p3, %p1063_p2 }
  0x2b   :  { %1071 = shalt.err (!%p1068_p4)
}
  0x2c   :  { %s1072_s5 = scalar_lea.vmem %s22_s28, 128  ;;  %p1077_p6 = scmp.lt.s32.totalorder %s22_s28, %s22_s28 }
  0x2d   :  { %p1073_p5 = scmp.ne.s32.totalorder %s22_s28, %s1072_s5  ;;  %p1078_p7 = scmp.lt.s32.totalorder %s1072_s5, %s1072_s5 }
  0x2f   :  { %p1079_p8 = por %p1078_p7, %p1077_p6 }
  0x31   :  { %p1080_p9 = pnand %p1079_p8, %p1073_p5 }
  0x33   :  { %1083 = shalt.err (!%p1080_p9)
}
  0x34   :  { %27 = dma.hbm_to_vmem [thread:$0]  %s1405_s0, 128, %s22_s28, [#allocation3], %s1160_s13, %s1160_s13, %s1161_s14  }
  0x35   :  { %s1084_s20 = scalar_lea.hbm %s1408_s3, 512 }
  0x36   :  { %p1085_p10 = scmp.ne.s32.totalorder %s1408_s3, %s1084_s20  ;;  %p1088_p11 = scmp.lt.u32.totalorder %s1084_s20, %s1408_s3 }
  0x38   :  { %p1090_p12 = pnand %p1088_p11, %p1085_p10 }
  0x3a   :  { %1093 = shalt.err (!%p1090_p12)
}
  0x3b   :  { %s1094_s1 = scalar_lea.vmem %s1247_s30, 512  ;;  %p1099_p0 = scmp.lt.s32.totalorder %s1247_s30, %s1247_s30 }
  0x3c   :  { %p1095_p13 = scmp.ne.s32.totalorder %s1247_s30, %s1094_s1  ;;  %p1100_p1 = scmp.lt.s32.totalorder %s1094_s1, %s1094_s1 }
  0x3e   :  { %p1101_p2 = por %p1100_p1, %p1099_p0 }
  0x40   :  { %p1102_p3 = pnand %p1101_p2, %p1095_p13 }
  0x42   :  { %1105 = shalt.err (!%p1102_p3)
}
  0x43   :  { %53 = dma.hbm_to_vmem [thread:$0]  %s1408_s3, 512, %s1247_s30, [#allocation6], %s1160_s13, %s1160_s13, %s1161_s14  }
  0x44   :  { %s1164_s26 = smov [#allocation10]   ;;  %s1106_s9 = scalar_lea.hbm %s1411_s6, 1024 }
  0x45   :  { %s73_s28 = sshll.u32 %s1164_s26, 4  ;;  %p1107_p4 = scmp.ne.s32.totalorder %s1411_s6, %s1106_s9  ;;  %s74_s28 = int_to_ptr.vmem [resolvable:$true] %s73_s28 }
  0x46   :  { %p1110_p5 = scmp.lt.u32.totalorder %s1106_s9, %s1411_s6 }
  0x48   :  { %p1112_p6 = pnand %p1110_p5, %p1107_p4 }
  0x4a   :  { %1115 = shalt.err (!%p1112_p6)
}
  0x4b   :  { %s1116_s16 = scalar_lea.vmem %s74_s28, 1024  ;;  %p1121_p8 = scmp.lt.s32.totalorder %s74_s28, %s74_s28 }
  0x4c   :  { %p1117_p7 = scmp.ne.s32.totalorder %s74_s28, %s1116_s16  ;;  %p1122_p9 = scmp.lt.s32.totalorder %s1116_s16, %s1116_s16 }
  0x4e   :  { %p1123_p10 = por %p1122_p9, %p1121_p8 }
  0x50   :  { %p1124_p11 = pnand %p1123_p10, %p1117_p7 }
  0x52   :  { %1127 = shalt.err (!%p1124_p11)
}
  0x53   :  { %79 = dma.hbm_to_vmem [thread:$0]  %s1411_s6, 1024, %s74_s28, [#allocation9], %s1160_s13, %s1160_s13, %s1161_s14  }
  0x54   :  { %1150 = dma.done.wait [#allocation3], 128  }
  0x55   :  { %1151 = vsyncadd [#allocation3], 4294967168 }
  0x56   :  { %1152 = dma.done.wait [#allocation6], 640  }
  0x57   :  { %1153 = vsyncadd [#allocation6], 4294966656 }
  0x58   :  { %1154 = dma.done.wait [#allocation9], 1408  }
  0x59   :  { %1155 = vsyncadd [#allocation9], 4294965888  ;;  %v1165_v0 = vmov 0.0   ;;  %vm1166_vm0 = vmmov 0   ;;  %v987_v1 = vld [vmem:[#allocation8] sm:$0xff]   ;;  %v1305_v2 = vld [vmem:[#allocation2] sm:$0xff]  }
  0x5a   :  { %879 = vmatprep.subr.bf16.mxu0 %v1165_v0  ;;  %881 = vmatprep.mubr.msk.bf16.mxu0 %vm1166_vm0, %v1165_v0  ;;  %vm122_vm1 = vcmask 130048   ;;  %v1307_v3 = vld [vmem:[#allocation7] sm:$0xff]   ;;  %v1309_v4 = vld [vmem:[#allocation7 + $0x8] sm:$0xff]   ;;  %v991_v5 = vld [vmem:[#allocation7 + $0x10] sm:$0xff]   ;;  %vm203_vm2 = vcmask 523264  }
  0x5b   :  { %885 = vmatprep.subr.bf16.mxu1 %v1165_v0  ;;  %893 = vmatprep.mubr.msk.bf16.mxu1 %vm1166_vm0, %v1165_v0  ;;  %v992_v6 = vld [vmem:[#allocation7 + $0x18] sm:$0xff]   ;;  %v816_v7 = vld [vmem:[%s1407_s2] ss:$0 sm:$0xff]  ;;  %v995_v20 = vld [vmem:[#allocation10 + $0x8] sm:$0xff]  }
  0x5c   :  { %880 = vmatpush3.bf16.msra.mxu0 %v987_v1  ;;  %886 = vmatpush3.bf16.msra.mxu1 %v1307_v3  ;;  %v1333_v18 = vld [vmem:[%s1409_s4] sm:$0xf]  ;;  %v994_v19 = vld [vmem:[#allocation10] sm:$0xff]   ;;  %v996_v21 = vld [vmem:[#allocation10 + $0x10] sm:$0xff]   ;;  %s1167_s4 = smov [#allocation11]  }
  0x5d   :  { %897 = vmatprep.subr.bf16.mxu0 %v1165_v0  ;;  %887 = vmatprep.subr.bf16.mxu1 %v1165_v0  ;;  %v1342_v31 = vld [vmem:[#allocation5] sm:$0xff]   ;;  %v997_v32 = vld [vmem:[#allocation8 + $0x8] sm:$0xff]   ;;  %v998_v39 = vld [vmem:[#allocation10 + $0x18] sm:$0xff]   ;;  %s799_s5 = sshll.u32 %s1167_s4, 4  ;;  %s800_s5 = int_to_ptr.vmem [resolvable:$true] %s799_s5 }
  0x5e   :  { %v999_v59 = vld [vmem:[#allocation10 + $0x20] sm:$0xff]   ;;  %v1000_v60 = vld [vmem:[#allocation10 + $0x28] sm:$0xff]   ;;  %v1001_v61 = vld [vmem:[#allocation10 + $0x30] sm:$0xff]   ;;  %s1128_s27 = scalar_lea.vmem %s800_s5, 384  ;;  %p1133_p13 = scmp.lt.s32.totalorder %s800_s5, %s800_s5 }
  0x5f   :  { %882 = vmatmul.mubr.msk.bf16.vlgmr.msra.gmra.mrb[0].mxu0 %vm122_vm1, %v1305_v2  ;;  %p1129_p12 = scmp.ne.s32.totalorder %s800_s5, %s1128_s27  ;;  %p1134_p0 = scmp.lt.s32.totalorder %s1128_s27, %s1128_s27 }
  0x60   :  { %899 = vmatprep.mubr.msk.bf16.mxu0 %vm1166_vm0, %v1165_v0  ;;  %888 = vmatpush3.bf16.msra.mxu1 %v1309_v4 }
  0x61   :  { %889 = vmatprep.subr.bf16.mxu1 %v1165_v0  ;;  %p1135_p1 = por %p1134_p0, %p1133_p13 }
  0x63   :  { %p1136_p2 = pnand %p1135_p1, %p1129_p12 }
  0x64   :  { %890 = vmatpush3.bf16.msra.mxu1 %v991_v5 }
  0x65   :  { %891 = vmatprep.subr.bf16.mxu1 %v1165_v0 }
  0x68   :  { %892 = vmatpush3.bf16.msra.mxu1 %v992_v6 }
  0x69   :  { %909 = vmatprep.subr.bf16.mxu1 %v1165_v0 }
 0x132   :  { %v160_v8 = vpop.f32.mrb[0].mxu0 }
 0x133   :  { %v174_v9 = vmul.f32 %v816_v7, %v160_v8  ;;  %v883_v10 = vpop.f32.mrb[1].mxu0 }
 0x134   :  { %v163_v11 = vpop.f32.mrb[2].mxu0 }
 0x135   :  { %v175_v12 = vmul.f32 %v816_v7, %v163_v11  ;;  %v884_v13 = vpop.f32.mrb[3].mxu0  ;;  %v176_v14 = vadd.f32 1e-12, %v174_v9 }
 0x137   :  { %v177_v15 = vadd.f32 1e-12, %v175_v12 }
 0x139   :  { %v178_v16 = vpack.c.bf16 %v177_v15, %v176_v14 }
 0x13b   :  { %894 = vmatmul.mubr.msk.bf16.vlgmr.msra.gmra.mrb[0].mxu1 %vm203_vm2, %v178_v16  ;;  %v205_v17 = vsel %vm203_vm2, %v178_v16, 0  ;;  %v1002_v16 = vld [vmem:[#allocation10 + $0x38] sm:$0xff]  }
 0x13c   :  { %898 = vmatpush3.bf16.xpose.msra.mxu0 %v205_v17  ;;  %917 = vmatprep.mubr.msk.bf16.mxu1 %vm1166_vm0, %v1165_v0 }
 0x13d   :  { %903 = vmatprep.subr.bf16.mxu0 %v1165_v0  ;;  %910 = vmatpush3.bf16.msra.mxu1 %v994_v19 }
 0x13e   :  { %911 = vmatprep.subr.bf16.mxu1 %v1165_v0 }
 0x141   :  { %912 = vmatpush3.bf16.msra.mxu1 %v995_v20 }
 0x142   :  { %913 = vmatprep.subr.bf16.mxu1 %v1165_v0 }
 0x143   :  { %900 = vmatmul.mubr.msk.bf16.vlgmr.msra.gmra.mrb[4].mxu0 %vm203_vm2, %v1333_v18 }
 0x144   :  { %905 = vmatprep.mubr.msk.bf16.mxu0 %vm1166_vm0, %v1165_v0 }
 0x145   :  { %914 = vmatpush3.bf16.msra.mxu1 %v996_v21 }
 0x146   :  { %915 = vmatprep.subr.bf16.mxu1 %v1165_v0 }
 0x149   :  { %916 = vmatpush3.bf16.msra.mxu1 %v998_v39 }
 0x14a   :  { %939 = vmatprep.subr.bf16.mxu1 %v1165_v0 }
 0x20e   :  { %v241_v22 = vpop.f32.mrb[0].mxu1 }
 0x20f   :  { %1004 = vrcp.f32 %v241_v22  ;;  %v895_v23 = vpop.f32.mrb[1].mxu1 }
 0x210   :  { %v244_v24 = vpop.f32.mrb[2].mxu1 }
 0x211   :  { %1006 = vrcp.f32 %v244_v24  ;;  %v896_v25 = vpop.f32.mrb[3].mxu1 }
 0x216   :  { %v285_v33 = vpop.f32.mrb[4].mxu0 }
 0x217   :  { %1008 = vlog2.f32 %v285_v33  ;;  %v901_v34 = vpop.f32.mrb[5].mxu0 }
 0x218   :  { %v288_v35 = vpop.f32.mrb[6].mxu0 }
 0x219   :  { %v1005_v26 = vpop.eup %1004  ;;  %v902_v36 = vpop.f32.mrb[7].mxu0 }
 0x21a   :  { %v296_v28 = vmul.f32 %v1005_v26, %v176_v14 }
 0x21b   :  { %v1007_v27 = vpop.eup %1006 }
 0x21c   :  { %v297_v29 = vmul.f32 %v1007_v27, %v177_v15  ;;  %v1003_v15 = vld [vmem:[#allocation8 + $0x10] sm:$0xff]  }
 0x21e   :  { %v298_v30 = vpack.c.bf16 %v297_v29, %v296_v28 }
 0x220   :  { %904 = vmatpush3.bf16.msra.mxu0 %v298_v30 }
 0x221   :  { %921 = vmatprep.subr.bf16.mxu0 %v1165_v0  ;;  %v1009_v37 = vpop.eup %1008 }
 0x222   :  { %v292_v38 = vmul.f32 0.6931472, %v1009_v37 }
 0x223   :  { %906 = vmatmul.mubr.msk.bf16.vlgmr.msra.gmra.mrb[8].mxu0 %vm122_vm1, %v1342_v31 }
 0x224   :  { %922 = vmatpush3.bf16.msra.mxu0 %v997_v32  ;;  %923 = vmatprep.mubr.msk.bf16.mxu0 %vm1166_vm0, %v1165_v0  ;;  %293 = vst.msk [vmem:[#allocation11] sm:$0xff] %vm122_vm1, %v292_v38 }
 0x225   :  { %927 = vmatprep.subr.bf16.mxu0 %v1165_v0 }
 0x22b   :  { %924 = vmatmul.mubr.msk.bf16.vlgmr.msra.gmra.mrb[12].mxu0 %vm122_vm1, %v1305_v2 }
 0x22c   :  { %928 = vmatpush3.bf16.msra.mxu0 %v1307_v3  ;;  %935 = vmatprep.mubr.msk.bf16.mxu0 %vm1166_vm0, %v1165_v0 }
 0x22d   :  { %929 = vmatprep.subr.bf16.mxu0 %v1165_v0 }
 0x230   :  { %930 = vmatpush3.bf16.msra.mxu0 %v1309_v4 }
 0x231   :  { %931 = vmatprep.subr.bf16.mxu0 %v1165_v0 }
 0x234   :  { %932 = vmatpush3.bf16.msra.mxu0 %v991_v5 }
 0x235   :  { %933 = vmatprep.subr.bf16.mxu0 %v1165_v0 }
 0x238   :  { %934 = vmatpush3.bf16.msra.mxu0 %v992_v6 }
 0x239   :  { %951 = vmatprep.subr.bf16.mxu0 %v1165_v0 }
 0x2f6   :  { %v341_v40 = vpop.f32.mrb[8].mxu0 }
 0x2f7   :  { %v907_v41 = vpop.f32.mrb[9].mxu0 }
 0x2f8   :  { %v344_v42 = vpop.f32.mrb[10].mxu0 }
 0x2f9   :  { %v348_v43 = vpack.c.bf16 %v344_v42, %v341_v40  ;;  %v908_v44 = vpop.f32.mrb[11].mxu0 }
 0x2fb   :  { %918 = vmatmul.mubr.msk.bf16.vlgmr.msra.gmra.mrb[4].mxu1 %vm203_vm2, %v348_v43 }
 0x2fc   :  { %941 = vmatprep.mubr.msk.bf16.mxu1 %vm1166_vm0, %v1165_v0 }
 0x2fe   :  { %v468_v45 = vpop.f32.mrb[12].mxu0 }
 0x2ff   :  { %v925_v46 = vpop.f32.mrb[13].mxu0 }
 0x300   :  { %v471_v47 = vpop.f32.mrb[14].mxu0 }
 0x301   :  { %v926_v48 = vpop.f32.mrb[15].mxu0 }
 0x3ce   :  { %v418_v49 = vpop.f32.mrb[4].mxu1 }
 0x3cf   :  { %v475_v50 = vmul.f32 %v468_v45, %v418_v49  ;;  %v919_v51 = vpop.f32.mrb[5].mxu1 }
 0x3d0   :  { %v421_v52 = vpop.f32.mrb[6].mxu1 }
 0x3d1   :  { %v476_v53 = vmul.f32 %v471_v47, %v421_v52  ;;  %v920_v54 = vpop.f32.mrb[7].mxu1  ;;  %v477_v55 = vadd.f32 8e-12, %v475_v50 }
 0x3d3   :  { %v478_v56 = vadd.f32 8e-12, %v476_v53 }
 0x3d5   :  { %v479_v57 = vpack.c.bf16 %v478_v56, %v477_v55 }
 0x3d7   :  { %936 = vmatmul.mubr.msk.bf16.vlgmr.msra.gmra.mrb[16].mxu0 %vm203_vm2, %v479_v57  ;;  %v481_v58 = vsel %vm203_vm2, %v479_v57, 0 }
 0x3d8   :  { %940 = vmatpush3.bf16.xpose.msra.mxu1 %v481_v58  ;;  %959 = vmatprep.mubr.msk.bf16.mxu0 %vm1166_vm0, %v1165_v0 }
 0x3d9   :  { %945 = vmatprep.subr.bf16.mxu1 %v1165_v0  ;;  %952 = vmatpush3.bf16.msra.mxu0 %v999_v59 }
 0x3da   :  { %953 = vmatprep.subr.bf16.mxu0 %v1165_v0 }
 0x3dd   :  { %954 = vmatpush3.bf16.msra.mxu0 %v1000_v60 }
 0x3de   :  { %955 = vmatprep.subr.bf16.mxu0 %v1165_v0 }
 0x3df   :  { %942 = vmatmul.mubr.msk.bf16.vlgmr.msra.gmra.mrb[8].mxu1 %vm203_vm2, %v1333_v18 }
 0x3e0   :  { %947 = vmatprep.mubr.msk.bf16.mxu1 %vm1166_vm0, %v1165_v0 }
 0x3e1   :  { %956 = vmatpush3.bf16.msra.mxu0 %v1001_v61 }
 0x3e2   :  { %957 = vmatprep.subr.bf16.mxu0 %v1165_v0 }
 0x3e5   :  { %958 = vmatpush3.bf16.msra.mxu0 %v1002_v16 }
 0x4aa   :  { %v517_v62 = vpop.f32.mrb[16].mxu0 }
 0x4ab   :  { %1010 = vrcp.f32 %v517_v62  ;;  %v937_v63 = vpop.f32.mrb[17].mxu0 }
 0x4ac   :  { %v520_v1 = vpop.f32.mrb[18].mxu0 }
 0x4ad   :  { %1012 = vrcp.f32 %v520_v1  ;;  %v938_v3 = vpop.f32.mrb[19].mxu0 }
 0x4b2   :  { %v558_v4 = vpop.f32.mrb[8].mxu1 }
 0x4b3   :  { %1014 = vlog2.f32 %v558_v4  ;;  %v943_v5 = vpop.f32.mrb[9].mxu1 }
 0x4b4   :  { %v561_v6 = vpop.f32.mrb[10].mxu1 }
 0x4b5   :  { %v1011_v7 = vpop.eup %1010  ;;  %v944_v8 = vpop.f32.mrb[11].mxu1 }
 0x4b6   :  { %v570_v10 = vmul.f32 %v1011_v7, %v477_v55 }
 0x4b7   :  { %v1013_v9 = vpop.eup %1012 }
 0x4b8   :  { %v571_v11 = vmul.f32 %v1013_v9, %v478_v56 }
 0x4ba   :  { %v572_v12 = vpack.c.bf16 %v571_v11, %v570_v10 }
 0x4bc   :  { %946 = vmatpush3.bf16.msra.mxu1 %v572_v12 }
 0x4bd   :  { %v1015_v13 = vpop.eup %1014  ;;  %963 = vmatprep.subr.bf16.mxu1 %v1165_v0 }
 0x4be   :  { %v565_v14 = vmul.f32 0.6931472, %v1015_v13 }
 0x4bf   :  { %948 = vmatmul.mubr.msk.bf16.vlgmr.msra.gmra.mrb[12].mxu1 %vm122_vm1, %v1342_v31 }
 0x4c0   :  { %567 = vst.msk [vmem:[#allocation11 + $0x8] sm:$0xff] %vm122_vm1, %v565_v14  ;;  %965 = vmatprep.mubr.msk.bf16.mxu1 %vm1166_vm0, %v1165_v0  ;;  %964 = vmatpush3.bf16.msra.mxu1 %v1003_v15 }
 0x4c1   :  { %969 = vmatprep.subr.bf16.mxu1 %v1165_v0 }
 0x4c7   :  { %966 = vmatmul.mubr.msk.bf16.vlgmr.msra.gmra.mrb[16].mxu1 %vm122_vm1, %v1305_v2 }
 0x4c8   :  { %971 = vmatprep.mubr.msk.bf16.mxu1 %vm1166_vm0, %v1165_v0 }
 0x592   :  { %v607_v17 = vpop.f32.mrb[12].mxu1 }
 0x593   :  { %v949_v19 = vpop.f32.mrb[13].mxu1 }
 0x594   :  { %v610_v20 = vpop.f32.mrb[14].mxu1 }
 0x595   :  { %v614_v21 = vpack.c.bf16 %v610_v20, %v607_v17  ;;  %v950_v22 = vpop.f32.mrb[15].mxu1 }
 0x597   :  { %960 = vmatmul.mubr.msk.bf16.vlgmr.msra.gmra.mrb[20].mxu0 %vm203_vm2, %v614_v21 }
 0x59a   :  { %v735_v23 = vpop.f32.mrb[16].mxu1 }
 0x59b   :  { %v967_v24 = vpop.f32.mrb[17].mxu1 }
 0x59c   :  { %v738_v25 = vpop.f32.mrb[18].mxu1 }
 0x59d   :  { %v968_v26 = vpop.f32.mrb[19].mxu1 }
 0x66a   :  { %v685_v27 = vpop.f32.mrb[20].mxu0 }
 0x66b   :  { %v742_v28 = vmul.f32 %v735_v23, %v685_v27  ;;  %v961_v29 = vpop.f32.mrb[21].mxu0 }
 0x66c   :  { %v688_v30 = vpop.f32.mrb[22].mxu0 }
 0x66d   :  { %v743_v31 = vmul.f32 %v738_v25, %v688_v30  ;;  %v962_v2 = vpop.f32.mrb[23].mxu0  ;;  %v744_v32 = vadd.f32 8e-12, %v742_v28 }
 0x66f   :  { %v745_v33 = vadd.f32 8e-12, %v743_v31 }
 0x671   :  { %v746_v0 = vpack.c.bf16 %v745_v33, %v744_v32 }
 0x673   :  { %v748_v34 = vsel %vm203_vm2, %v746_v0, 0 }
 0x674   :  { %970 = vmatpush3.bf16.xpose.msra.mxu1 %v748_v34 }
 0x67b   :  { %972 = vmatmul.mubr.msk.bf16.vlgmr.msra.gmra.mrb[20].mxu1 %vm203_vm2, %v1333_v18 }
 0x74e   :  { %v784_v35 = vpop.f32.mrb[20].mxu1 }
 0x74f   :  { %1016 = vlog2.f32 %v784_v35  ;;  %v973_v36 = vpop.f32.mrb[21].mxu1 }
 0x750   :  { %v787_v37 = vpop.f32.mrb[22].mxu1 }
 0x751   :  { %v974_v38 = vpop.f32.mrb[23].mxu1 }
 0x759   :  { %v1017_v39 = vpop.eup %1016 }
 0x75a   :  { %v791_v40 = vmul.f32 0.6931472, %v1017_v39 }
 0x75c   :  { %793 = vst.msk [vmem:[#allocation11 + $0x10] sm:$0xff] %vm122_vm1, %v791_v40 }
 0x75d   :  { %1139 = shalt.err (!%p1136_p2)
}
 0x75e   :  { %s1140_s19 = scalar_lea.hbm %s1412_s7, 384 }
 0x75f   :  { %p1141_p3 = scmp.ne.s32.totalorder %s1412_s7, %s1140_s19  ;;  %p1144_p4 = scmp.lt.u32.totalorder %s1140_s19, %s1412_s7 }
 0x761   :  { %p1146_p5 = pnand %p1144_p4, %p1141_p3 }
 0x763   :  { %1149 = shalt.err (!%p1146_p5)
}
 0x764   :  { %s1168_s24 = smov 128   ;;  %s1169_s1 = smov 8  }
 0x765   :  { %805 = dma.vmem_to_hbm [thread:$0]  %s800_s5, 384, %s1412_s7, [#allocation4], %s1168_s24, %s1168_s24, %s1169_s1  }
 0x766   :  { %1156 = dma.done.wait [#allocation4], 384  }
 0x767   :  { %1157 = vsyncadd [#allocation4], 4294966912 }
 0x768   :  { %809 = vsyncpa [#allocation3], 1 }
 0x769   :  { %810 = vsyncpa [#allocation6], 1 }
 0x76a   :  { %811 = vsyncpa [#allocation9], 1 }
 0x76b   :  { %812 = vsyncpa [#allocation4], 1 }

</bundles_post_ra>
